<compile_context>
chip_gen: v7x
topology: tpu7x:2x2x1
jax: 0.10.0
libtpu: 0.0.40
codegen_flags: <defaults>
</compile_context>

<pallas_src>
import functools

import jax
import jax.numpy as jnp
import numpy as np
from jax import lax
from jax.experimental import pallas as pl
from jax.experimental.pallas import tpu as pltpu


def siamese_lstm_kernel(x_ref, wih_ref, whh_ref, b_ref, h0_ref, c0_ref,
                        pred_ref, *, num_layers):
    """Single invocation: full T-step recurrence for BOTH branches (fused on
    the batch axis), final L1 distance + exp.

    x_ref   : (T, 2B, E)  embedded inputs, branches stacked on batch axis
    wih_ref : (E, 4H)     gate column order [i | f | o | g]
    whh_ref : (H, 4H)
    b_ref   : (1, 4H)     b_ih + b_hh, same gate order
    h0_ref  : (2B, H)     [h0_a; h0_b]
    c0_ref  : (2B, H)     [c0_a; c0_b]
    pred_ref: (1, B)      exp(-||h_a - h_b||_1), lane-major
    """
    T = x_ref.shape[0]
    H = whh_ref.shape[0]
    B2 = h0_ref.shape[0]
    B = B2 // 2

    # Hoist weight / bias loads (and the bias broadcast) out of the time loop.
    wih = wih_ref[...]                                    # (E, 4H)
    whh = whh_ref[...]                                    # (H, 4H)
    bias = jnp.broadcast_to(b_ref[...], (B2, 4 * H))      # (2B, 4H), once

    def lstm_cell(x, h, c):
        # One MXU push per weight covers both siamese branches.
        gates = (jnp.dot(x, wih, preferred_element_type=jnp.float32)
                 + jnp.dot(h, whh, preferred_element_type=jnp.float32)
                 + bias)                                   # (2B, 4H)
        # Gate order [i | f | o | g]: one wide sigmoid over 3H lanes.
        sig = jax.nn.sigmoid(gates[:, :3 * H])
        i = sig[:, 0 * H:1 * H]
        f = sig[:, 1 * H:2 * H]
        o = sig[:, 2 * H:3 * H]
        g = jnp.tanh(gates[:, 3 * H:4 * H])
        c_new = f * c + i * g
        h_new = o * jnp.tanh(c_new)
        return h_new, c_new

    def step(t, carry):
        h, c = carry
        out = x_ref[t]                                     # (2B, E)
        # LSTMEncoder.forward re-applies its single-layer LSTM num_layers
        # times per time step (only shape-correct for E == H if > 1).
        for _ in range(num_layers):
            h, c = lstm_cell(out, h, c)
            out = h
        return h, c

    h, _ = lax.fori_loop(0, T, step, (h0_ref[...], c0_ref[...]), unroll=True)

    # prediction[0, b] = exp(-sum_h |h_a[b,h] - h_b[b,h]|)
    # Reduce over H with a (1,H)x(B,H)^T dot_general so the result lands
    # directly as a lane-major (1, B) row — no (B,1) store, no relayout.
    diff = jnp.abs(h[:B, :] - h[B:, :])                    # (B, H)
    ones_row = jnp.ones((1, H), jnp.float32)
    dist = lax.dot_general(ones_row, diff,
                           (((1,), (1,)), ((), ())),
                           preferred_element_type=jnp.float32)   # (1, B)
    pred_ref[...] = jnp.exp(-dist)


def siamese_forward(tokens_a, tokens_b, params, h0a, c0a, h0b, c0b,
                    *, num_layers=1):
    T, B = tokens_a.shape
    emb = params['embedding']                              # (V, E)
    E = emb.shape[1]
    H = params['w_hh'].shape[0]

    # Glue: embedding lookup (padding_idx=0 row is zero in the table).
    # TODO(synk): optionally fuse the gather in-kernel via scalar-prefetched
    # tokens + a VMEM-resident table; kept as XLA glue (tables/activations are
    # only a few KB here).
    x_a = jnp.take(emb, tokens_a, axis=0)                  # (T, B, E)
    x_b = jnp.take(emb, tokens_b, axis=0)                  # (T, B, E)

    # Fuse both branches along the batch axis; stack the initial states.
    x = jnp.concatenate([x_a, x_b], axis=1)                # (T, 2B, E)
    h0 = jnp.concatenate([h0a, h0b], axis=0)               # (2B, H)
    c0 = jnp.concatenate([c0a, c0b], axis=0)               # (2B, H)

    # Reorder gate columns from torch order [i,f,g,o] to kernel order
    # [i,f,o,g] so sigmoid covers one contiguous 3H-lane block.
    def reorder(w):
        i, f, g, o = jnp.split(w, 4, axis=-1)
        return jnp.concatenate([i, f, o, g], axis=-1)

    w_ih = reorder(params['w_ih'])                         # (E, 4H)
    w_hh = reorder(params['w_hh'])                         # (H, 4H)
    bias = reorder(params['bias'])                         # (1, 4H)

    kernel = functools.partial(siamese_lstm_kernel, num_layers=num_layers)
    vmem = pl.BlockSpec(memory_space=pltpu.MemorySpace.VMEM)

    pred = pl.pallas_call(
        kernel,
        out_shape=jax.ShapeDtypeStruct((1, B), jnp.float32),
        in_specs=[vmem] * 6,       # everything fully VMEM-resident (~20 KB)
        out_specs=vmem,
    )(x, w_ih, w_hh, bias, h0, c0)

    return pred[0]                                         # (B,) == self.prediction


def init_params(key, vocab_size, embedding_dims, hidden_dims):
    """Deterministic synthetic init mimicking SiameseClassifier.initialize_parameters:
    xavier_normal on weights, forget-gate bias slice filled with 2.5 (in both
    b_ih and b_hh), embedding row 0 zeroed (padding_idx=0)."""
    E, H = embedding_dims, hidden_dims
    k_emb, k_wih, k_whh, k_bih, k_bhh = jax.random.split(key, 5)

    emb = jax.random.normal(k_emb, (vocab_size, E), jnp.float32)
    emb = emb.at[0].set(0.0)                               # padding_idx=0

    def xavier_normal(k, fan_out, fan_in):
        std = (2.0 / (fan_in + fan_out)) ** 0.5
        return std * jax.random.normal(k, (fan_out, fan_in), jnp.float32)

    w_ih_pt = xavier_normal(k_wih, 4 * H, E)               # PyTorch layout (4H, E)
    w_hh_pt = xavier_normal(k_whh, 4 * H, H)               # PyTorch layout (4H, H)

    bound = 1.0 / np.sqrt(H)
    b_ih = jax.random.uniform(k_bih, (4 * H,), jnp.float32, -bound, bound)
    b_hh = jax.random.uniform(k_bhh, (4 * H,), jnp.float32, -bound, bound)
    b_ih = b_ih.at[H:2 * H].set(2.5)                       # forget-gate bias fill
    b_hh = b_hh.at[H:2 * H].set(2.5)

    return {
        'embedding': emb,
        'w_ih': jnp.asarray(w_ih_pt.T),                    # (E, 4H), gate order i,f,g,o
        'w_hh': jnp.asarray(w_hh_pt.T),                    # (H, 4H)
        'bias': (b_ih + b_hh)[None, :],                    # (1, 4H)
    }


def reference_forward(tokens_a, tokens_b, params, h0a, c0a, h0b, c0b):
    """Pure-JAX reference of the same forward pass (torch gate order i,f,g,o)."""
    emb = params['embedding']
    wih, whh = params['w_ih'], params['w_hh']
    bias = params['bias'][0]
    H = whh.shape[0]

    def cell(x, h, c):
        g = x @ wih + h @ whh + bias
        i = jax.nn.sigmoid(g[:, :H])
        f = jax.nn.sigmoid(g[:, H:2 * H])
        gg = jnp.tanh(g[:, 2 * H:3 * H])
        o = jax.nn.sigmoid(g[:, 3 * H:])
        c = f * c + i * gg
        h = o * jnp.tanh(c)
        return h, c

    def run(tokens, h, c):
        for t in range(tokens.shape[0]):
            h, c = cell(emb[tokens[t]], h, c)
        return h

    ha = run(tokens_a, h0a, c0a)
    hb = run(tokens_b, h0b, c0b)
    return jnp.exp(-jnp.sum(jnp.abs(ha - hb), axis=1))


if __name__ == "__main__":
    VOCAB, E, H = 50, 16, 32     # vocab_size, opt.embedding_dims, opt.hidden_dims
    T, B = 8, 4                  # input_length (seq), batch_size

    key = jax.random.PRNGKey(0)
    k_par, k_ta, k_tb, k_ha, k_ca, k_hb, k_cb = jax.random.split(key, 7)

    params = init_params(k_par, VOCAB, E, H)

    tokens_a = jax.random.randint(k_ta, (T, B), 0, VOCAB, dtype=jnp.int32)
    tokens_b = jax.random.randint(k_tb, (T, B), 0, VOCAB, dtype=jnp.int32)

    # initialize_hidden_plus_cell uses torch.randn -> deterministic normals here.
    h0a = jax.random.normal(k_ha, (B, H), jnp.float32)
    c0a = jax.random.normal(k_ca, (B, H), jnp.float32)
    h0b = jax.random.normal(k_hb, (B, H), jnp.float32)
    c0b = jax.random.normal(k_cb, (B, H), jnp.float32)

    pred = siamese_forward(tokens_a, tokens_b, params, h0a, c0a, h0b, c0b)
    pred = jax.block_until_ready(pred)

    ref = reference_forward(tokens_a, tokens_b, params, h0a, c0a, h0b, c0b)
    np.testing.assert_allclose(np.asarray(pred), np.asarray(ref),
                               rtol=1e-5, atol=1e-5)

    print("KERNEL_OK")
</pallas_src>

<mosaic_0001>
module attributes {stable_mosaic.version = 11 : i64} {
  func.func @siamese_lstm_kernel(%arg0: memref<8x8x16xf32, #tpu.memory_space<vmem>>, %arg1: memref<16x128xf32, #tpu.memory_space<vmem>>, %arg2: memref<32x128xf32, #tpu.memory_space<vmem>>, %arg3: memref<1x128xf32, #tpu.memory_space<vmem>>, %arg4: memref<8x32xf32, #tpu.memory_space<vmem>>, %arg5: memref<8x32xf32, #tpu.memory_space<vmem>>, %arg6: memref<1x4xf32, #tpu.memory_space<vmem>>) attributes {dimension_semantics = [], scalar_prefetch = 0 : i64, scratch_operands = 0 : i64, tpu.core_type = #tpu.core_type<tc>} {
    %c0 = arith.constant 0 : index
    %c0_0 = arith.constant 0 : index
    %0 = vector.load %arg1[%c0, %c0_0] : memref<16x128xf32, #tpu.memory_space<vmem>>, vector<16x128xf32>
    %c0_1 = arith.constant 0 : index
    %c0_2 = arith.constant 0 : index
    %1 = vector.load %arg2[%c0_1, %c0_2] : memref<32x128xf32, #tpu.memory_space<vmem>>, vector<32x128xf32>
    %c0_3 = arith.constant 0 : index
    %c0_4 = arith.constant 0 : index
    %2 = vector.load %arg3[%c0_3, %c0_4] : memref<1x128xf32, #tpu.memory_space<vmem>>, vector<1x128xf32>
    %3 = vector.shape_cast %2 : vector<1x128xf32> to vector<1x128xf32>
    %4 = vector.broadcast %3 : vector<1x128xf32> to vector<8x128xf32>
    %c0_5 = arith.constant 0 : index
    %c0_6 = arith.constant 0 : index
    %5 = vector.load %arg4[%c0_5, %c0_6] : memref<8x32xf32, #tpu.memory_space<vmem>>, vector<8x32xf32>
    %c0_7 = arith.constant 0 : index
    %c0_8 = arith.constant 0 : index
    %6 = vector.load %arg5[%c0_7, %c0_8] : memref<8x32xf32, #tpu.memory_space<vmem>>, vector<8x32xf32>
    %c0_i32 = arith.constant 0 : i32
    %7 = arith.index_cast %c0_i32 : i32 to index
    %c0_9 = arith.constant 0 : index
    %c0_10 = arith.constant 0 : index
    %8 = vector.load %arg0[%7, %c0_9, %c0_10] : memref<8x8x16xf32, #tpu.memory_space<vmem>>, vector<1x8x16xf32>
    %9 = vector.shape_cast %8 : vector<1x8x16xf32> to vector<8x16xf32>
    %cst = arith.constant dense<0.000000e+00> : vector<8x128xf32>
    %10 = tpu.matmul %9, %0, %cst {dimension_numbers = #tpu.dot_dimension_numbers<[1], [0], [0], [1], [0, 0, 1, 1], [], []>} : vector<8x16xf32>, vector<16x128xf32>, vector<8x128xf32> -> vector<8x128xf32>
    %cst_11 = arith.constant dense<0.000000e+00> : vector<8x128xf32>
    %11 = tpu.matmul %5, %1, %cst_11 {dimension_numbers = #tpu.dot_dimension_numbers<[1], [0], [0], [1], [0, 0, 1, 1], [], []>} : vector<8x32xf32>, vector<32x128xf32>, vector<8x128xf32> -> vector<8x128xf32>
    %12 = arith.addf %10, %11 : vector<8x128xf32>
    %13 = arith.addf %12, %4 : vector<8x128xf32>
    %14 = vector.extract_strided_slice %13 {offsets = [0, 0], sizes = [8, 96], strides = [1, 1]} : vector<8x128xf32> to vector<8x96xf32>
    %15 = arith.negf %14 : vector<8x96xf32>
    %16 = math.exp %15 : vector<8x96xf32>
    %cst_12 = arith.constant 1.000000e+00 : f32
    %17 = vector.broadcast %cst_12 : f32 to vector<8x96xf32>
    %18 = arith.addf %17, %16 : vector<8x96xf32>
    %19 = arith.divf %17, %18 : vector<8x96xf32>
    %20 = vector.extract_strided_slice %19 {offsets = [0, 0], sizes = [8, 32], strides = [1, 1]} : vector<8x96xf32> to vector<8x32xf32>
    %21 = vector.extract_strided_slice %19 {offsets = [0, 32], sizes = [8, 32], strides = [1, 1]} : vector<8x96xf32> to vector<8x32xf32>
    %22 = vector.extract_strided_slice %19 {offsets = [0, 64], sizes = [8, 32], strides = [1, 1]} : vector<8x96xf32> to vector<8x32xf32>
    %23 = vector.extract_strided_slice %13 {offsets = [0, 96], sizes = [8, 32], strides = [1, 1]} : vector<8x128xf32> to vector<8x32xf32>
    %24 = math.tanh %23 : vector<8x32xf32>
    %25 = arith.mulf %21, %6 : vector<8x32xf32>
    %26 = arith.mulf %20, %24 : vector<8x32xf32>
    %27 = arith.addf %25, %26 : vector<8x32xf32>
    %28 = math.tanh %27 : vector<8x32xf32>
    %29 = arith.mulf %22, %28 : vector<8x32xf32>
    %c1_i32 = arith.constant 1 : i32
    %30 = arith.index_cast %c1_i32 : i32 to index
    %c0_13 = arith.constant 0 : index
    %c0_14 = arith.constant 0 : index
    %31 = vector.load %arg0[%30, %c0_13, %c0_14] : memref<8x8x16xf32, #tpu.memory_space<vmem>>, vector<1x8x16xf32>
    %32 = vector.shape_cast %31 : vector<1x8x16xf32> to vector<8x16xf32>
    %cst_15 = arith.constant dense<0.000000e+00> : vector<8x128xf32>
    %33 = tpu.matmul %32, %0, %cst_15 {dimension_numbers = #tpu.dot_dimension_numbers<[1], [0], [0], [1], [0, 0, 1, 1], [], []>} : vector<8x16xf32>, vector<16x128xf32>, vector<8x128xf32> -> vector<8x128xf32>
    %cst_16 = arith.constant dense<0.000000e+00> : vector<8x128xf32>
    %34 = tpu.matmul %29, %1, %cst_16 {dimension_numbers = #tpu.dot_dimension_numbers<[1], [0], [0], [1], [0, 0, 1, 1], [], []>} : vector<8x32xf32>, vector<32x128xf32>, vector<8x128xf32> -> vector<8x128xf32>
    %35 = arith.addf %33, %34 : vector<8x128xf32>
    %36 = arith.addf %35, %4 : vector<8x128xf32>
    %37 = vector.extract_strided_slice %36 {offsets = [0, 0], sizes = [8, 96], strides = [1, 1]} : vector<8x128xf32> to vector<8x96xf32>
    %38 = arith.negf %37 : vector<8x96xf32>
    %39 = math.exp %38 : vector<8x96xf32>
    %cst_17 = arith.constant 1.000000e+00 : f32
    %40 = vector.broadcast %cst_17 : f32 to vector<8x96xf32>
    %41 = arith.addf %40, %39 : vector<8x96xf32>
    %42 = arith.divf %40, %41 : vector<8x96xf32>
    %43 = vector.extract_strided_slice %42 {offsets = [0, 0], sizes = [8, 32], strides = [1, 1]} : vector<8x96xf32> to vector<8x32xf32>
    %44 = vector.extract_strided_slice %42 {offsets = [0, 32], sizes = [8, 32], strides = [1, 1]} : vector<8x96xf32> to vector<8x32xf32>
    %45 = vector.extract_strided_slice %42 {offsets = [0, 64], sizes = [8, 32], strides = [1, 1]} : vector<8x96xf32> to vector<8x32xf32>
    %46 = vector.extract_strided_slice %36 {offsets = [0, 96], sizes = [8, 32], strides = [1, 1]} : vector<8x128xf32> to vector<8x32xf32>
    %47 = math.tanh %46 : vector<8x32xf32>
    %48 = arith.mulf %44, %27 : vector<8x32xf32>
    %49 = arith.mulf %43, %47 : vector<8x32xf32>
    %50 = arith.addf %48, %49 : vector<8x32xf32>
    %51 = math.tanh %50 : vector<8x32xf32>
    %52 = arith.mulf %45, %51 : vector<8x32xf32>
    %c2_i32 = arith.constant 2 : i32
    %53 = arith.index_cast %c2_i32 : i32 to index
    %c0_18 = arith.constant 0 : index
    %c0_19 = arith.constant 0 : index
    %54 = vector.load %arg0[%53, %c0_18, %c0_19] : memref<8x8x16xf32, #tpu.memory_space<vmem>>, vector<1x8x16xf32>
    %55 = vector.shape_cast %54 : vector<1x8x16xf32> to vector<8x16xf32>
    %cst_20 = arith.constant dense<0.000000e+00> : vector<8x128xf32>
    %56 = tpu.matmul %55, %0, %cst_20 {dimension_numbers = #tpu.dot_dimension_numbers<[1], [0], [0], [1], [0, 0, 1, 1], [], []>} : vector<8x16xf32>, vector<16x128xf32>, vector<8x128xf32> -> vector<8x128xf32>
    %cst_21 = arith.constant dense<0.000000e+00> : vector<8x128xf32>
    %57 = tpu.matmul %52, %1, %cst_21 {dimension_numbers = #tpu.dot_dimension_numbers<[1], [0], [0], [1], [0, 0, 1, 1], [], []>} : vector<8x32xf32>, vector<32x128xf32>, vector<8x128xf32> -> vector<8x128xf32>
    %58 = arith.addf %56, %57 : vector<8x128xf32>
    %59 = arith.addf %58, %4 : vector<8x128xf32>
    %60 = vector.extract_strided_slice %59 {offsets = [0, 0], sizes = [8, 96], strides = [1, 1]} : vector<8x128xf32> to vector<8x96xf32>
    %61 = arith.negf %60 : vector<8x96xf32>
    %62 = math.exp %61 : vector<8x96xf32>
    %cst_22 = arith.constant 1.000000e+00 : f32
    %63 = vector.broadcast %cst_22 : f32 to vector<8x96xf32>
    %64 = arith.addf %63, %62 : vector<8x96xf32>
    %65 = arith.divf %63, %64 : vector<8x96xf32>
    %66 = vector.extract_strided_slice %65 {offsets = [0, 0], sizes = [8, 32], strides = [1, 1]} : vector<8x96xf32> to vector<8x32xf32>
    %67 = vector.extract_strided_slice %65 {offsets = [0, 32], sizes = [8, 32], strides = [1, 1]} : vector<8x96xf32> to vector<8x32xf32>
    %68 = vector.extract_strided_slice %65 {offsets = [0, 64], sizes = [8, 32], strides = [1, 1]} : vector<8x96xf32> to vector<8x32xf32>
    %69 = vector.extract_strided_slice %59 {offsets = [0, 96], sizes = [8, 32], strides = [1, 1]} : vector<8x128xf32> to vector<8x32xf32>
    %70 = math.tanh %69 : vector<8x32xf32>
    %71 = arith.mulf %67, %50 : vector<8x32xf32>
    %72 = arith.mulf %66, %70 : vector<8x32xf32>
    %73 = arith.addf %71, %72 : vector<8x32xf32>
    %74 = math.tanh %73 : vector<8x32xf32>
    %75 = arith.mulf %68, %74 : vector<8x32xf32>
    %c3_i32 = arith.constant 3 : i32
    %76 = arith.index_cast %c3_i32 : i32 to index
    %c0_23 = arith.constant 0 : index
    %c0_24 = arith.constant 0 : index
    %77 = vector.load %arg0[%76, %c0_23, %c0_24] : memref<8x8x16xf32, #tpu.memory_space<vmem>>, vector<1x8x16xf32>
    %78 = vector.shape_cast %77 : vector<1x8x16xf32> to vector<8x16xf32>
    %cst_25 = arith.constant dense<0.000000e+00> : vector<8x128xf32>
    %79 = tpu.matmul %78, %0, %cst_25 {dimension_numbers = #tpu.dot_dimension_numbers<[1], [0], [0], [1], [0, 0, 1, 1], [], []>} : vector<8x16xf32>, vector<16x128xf32>, vector<8x128xf32> -> vector<8x128xf32>
    %cst_26 = arith.constant dense<0.000000e+00> : vector<8x128xf32>
    %80 = tpu.matmul %75, %1, %cst_26 {dimension_numbers = #tpu.dot_dimension_numbers<[1], [0], [0], [1], [0, 0, 1, 1], [], []>} : vector<8x32xf32>, vector<32x128xf32>, vector<8x128xf32> -> vector<8x128xf32>
    %81 = arith.addf %79, %80 : vector<8x128xf32>
    %82 = arith.addf %81, %4 : vector<8x128xf32>
    %83 = vector.extract_strided_slice %82 {offsets = [0, 0], sizes = [8, 96], strides = [1, 1]} : vector<8x128xf32> to vector<8x96xf32>
    %84 = arith.negf %83 : vector<8x96xf32>
    %85 = math.exp %84 : vector<8x96xf32>
    %cst_27 = arith.constant 1.000000e+00 : f32
    %86 = vector.broadcast %cst_27 : f32 to vector<8x96xf32>
    %87 = arith.addf %86, %85 : vector<8x96xf32>
    %88 = arith.divf %86, %87 : vector<8x96xf32>
    %89 = vector.extract_strided_slice %88 {offsets = [0, 0], sizes = [8, 32], strides = [1, 1]} : vector<8x96xf32> to vector<8x32xf32>
    %90 = vector.extract_strided_slice %88 {offsets = [0, 32], sizes = [8, 32], strides = [1, 1]} : vector<8x96xf32> to vector<8x32xf32>
    %91 = vector.extract_strided_slice %88 {offsets = [0, 64], sizes = [8, 32], strides = [1, 1]} : vector<8x96xf32> to vector<8x32xf32>
    %92 = vector.extract_strided_slice %82 {offsets = [0, 96], sizes = [8, 32], strides = [1, 1]} : vector<8x128xf32> to vector<8x32xf32>
    %93 = math.tanh %92 : vector<8x32xf32>
    %94 = arith.mulf %90, %73 : vector<8x32xf32>
    %95 = arith.mulf %89, %93 : vector<8x32xf32>
    %96 = arith.addf %94, %95 : vector<8x32xf32>
    %97 = math.tanh %96 : vector<8x32xf32>
    %98 = arith.mulf %91, %97 : vector<8x32xf32>
    %c4_i32 = arith.constant 4 : i32
    %99 = arith.index_cast %c4_i32 : i32 to index
    %c0_28 = arith.constant 0 : index
    %c0_29 = arith.constant 0 : index
    %100 = vector.load %arg0[%99, %c0_28, %c0_29] : memref<8x8x16xf32, #tpu.memory_space<vmem>>, vector<1x8x16xf32>
    %101 = vector.shape_cast %100 : vector<1x8x16xf32> to vector<8x16xf32>
    %cst_30 = arith.constant dense<0.000000e+00> : vector<8x128xf32>
    %102 = tpu.matmul %101, %0, %cst_30 {dimension_numbers = #tpu.dot_dimension_numbers<[1], [0], [0], [1], [0, 0, 1, 1], [], []>} : vector<8x16xf32>, vector<16x128xf32>, vector<8x128xf32> -> vector<8x128xf32>
    %cst_31 = arith.constant dense<0.000000e+00> : vector<8x128xf32>
    %103 = tpu.matmul %98, %1, %cst_31 {dimension_numbers = #tpu.dot_dimension_numbers<[1], [0], [0], [1], [0, 0, 1, 1], [], []>} : vector<8x32xf32>, vector<32x128xf32>, vector<8x128xf32> -> vector<8x128xf32>
    %104 = arith.addf %102, %103 : vector<8x128xf32>
    %105 = arith.addf %104, %4 : vector<8x128xf32>
    %106 = vector.extract_strided_slice %105 {offsets = [0, 0], sizes = [8, 96], strides = [1, 1]} : vector<8x128xf32> to vector<8x96xf32>
    %107 = arith.negf %106 : vector<8x96xf32>
    %108 = math.exp %107 : vector<8x96xf32>
    %cst_32 = arith.constant 1.000000e+00 : f32
    %109 = vector.broadcast %cst_32 : f32 to vector<8x96xf32>
    %110 = arith.addf %109, %108 : vector<8x96xf32>
    %111 = arith.divf %109, %110 : vector<8x96xf32>
    %112 = vector.extract_strided_slice %111 {offsets = [0, 0], sizes = [8, 32], strides = [1, 1]} : vector<8x96xf32> to vector<8x32xf32>
    %113 = vector.extract_strided_slice %111 {offsets = [0, 32], sizes = [8, 32], strides = [1, 1]} : vector<8x96xf32> to vector<8x32xf32>
    %114 = vector.extract_strided_slice %111 {offsets = [0, 64], sizes = [8, 32], strides = [1, 1]} : vector<8x96xf32> to vector<8x32xf32>
    %115 = vector.extract_strided_slice %105 {offsets = [0, 96], sizes = [8, 32], strides = [1, 1]} : vector<8x128xf32> to vector<8x32xf32>
    %116 = math.tanh %115 : vector<8x32xf32>
    %117 = arith.mulf %113, %96 : vector<8x32xf32>
    %118 = arith.mulf %112, %116 : vector<8x32xf32>
    %119 = arith.addf %117, %118 : vector<8x32xf32>
    %120 = math.tanh %119 : vector<8x32xf32>
    %121 = arith.mulf %114, %120 : vector<8x32xf32>
    %c5_i32 = arith.constant 5 : i32
    %122 = arith.index_cast %c5_i32 : i32 to index
    %c0_33 = arith.constant 0 : index
    %c0_34 = arith.constant 0 : index
    %123 = vector.load %arg0[%122, %c0_33, %c0_34] : memref<8x8x16xf32, #tpu.memory_space<vmem>>, vector<1x8x16xf32>
    %124 = vector.shape_cast %123 : vector<1x8x16xf32> to vector<8x16xf32>
    %cst_35 = arith.constant dense<0.000000e+00> : vector<8x128xf32>
    %125 = tpu.matmul %124, %0, %cst_35 {dimension_numbers = #tpu.dot_dimension_numbers<[1], [0], [0], [1], [0, 0, 1, 1], [], []>} : vector<8x16xf32>, vector<16x128xf32>, vector<8x128xf32> -> vector<8x128xf32>
    %cst_36 = arith.constant dense<0.000000e+00> : vector<8x128xf32>
    %126 = tpu.matmul %121, %1, %cst_36 {dimension_numbers = #tpu.dot_dimension_numbers<[1], [0], [0], [1], [0, 0, 1, 1], [], []>} : vector<8x32xf32>, vector<32x128xf32>, vector<8x128xf32> -> vector<8x128xf32>
    %127 = arith.addf %125, %126 : vector<8x128xf32>
    %128 = arith.addf %127, %4 : vector<8x128xf32>
    %129 = vector.extract_strided_slice %128 {offsets = [0, 0], sizes = [8, 96], strides = [1, 1]} : vector<8x128xf32> to vector<8x96xf32>
    %130 = arith.negf %129 : vector<8x96xf32>
    %131 = math.exp %130 : vector<8x96xf32>
    %cst_37 = arith.constant 1.000000e+00 : f32
    %132 = vector.broadcast %cst_37 : f32 to vector<8x96xf32>
    %133 = arith.addf %132, %131 : vector<8x96xf32>
    %134 = arith.divf %132, %133 : vector<8x96xf32>
    %135 = vector.extract_strided_slice %134 {offsets = [0, 0], sizes = [8, 32], strides = [1, 1]} : vector<8x96xf32> to vector<8x32xf32>
    %136 = vector.extract_strided_slice %134 {offsets = [0, 32], sizes = [8, 32], strides = [1, 1]} : vector<8x96xf32> to vector<8x32xf32>
    %137 = vector.extract_strided_slice %134 {offsets = [0, 64], sizes = [8, 32], strides = [1, 1]} : vector<8x96xf32> to vector<8x32xf32>
    %138 = vector.extract_strided_slice %128 {offsets = [0, 96], sizes = [8, 32], strides = [1, 1]} : vector<8x128xf32> to vector<8x32xf32>
    %139 = math.tanh %138 : vector<8x32xf32>
    %140 = arith.mulf %136, %119 : vector<8x32xf32>
    %141 = arith.mulf %135, %139 : vector<8x32xf32>
    %142 = arith.addf %140, %141 : vector<8x32xf32>
    %143 = math.tanh %142 : vector<8x32xf32>
    %144 = arith.mulf %137, %143 : vector<8x32xf32>
    %c6_i32 = arith.constant 6 : i32
    %145 = arith.index_cast %c6_i32 : i32 to index
    %c0_38 = arith.constant 0 : index
    %c0_39 = arith.constant 0 : index
    %146 = vector.load %arg0[%145, %c0_38, %c0_39] : memref<8x8x16xf32, #tpu.memory_space<vmem>>, vector<1x8x16xf32>
    %147 = vector.shape_cast %146 : vector<1x8x16xf32> to vector<8x16xf32>
    %cst_40 = arith.constant dense<0.000000e+00> : vector<8x128xf32>
    %148 = tpu.matmul %147, %0, %cst_40 {dimension_numbers = #tpu.dot_dimension_numbers<[1], [0], [0], [1], [0, 0, 1, 1], [], []>} : vector<8x16xf32>, vector<16x128xf32>, vector<8x128xf32> -> vector<8x128xf32>
    %cst_41 = arith.constant dense<0.000000e+00> : vector<8x128xf32>
    %149 = tpu.matmul %144, %1, %cst_41 {dimension_numbers = #tpu.dot_dimension_numbers<[1], [0], [0], [1], [0, 0, 1, 1], [], []>} : vector<8x32xf32>, vector<32x128xf32>, vector<8x128xf32> -> vector<8x128xf32>
    %150 = arith.addf %148, %149 : vector<8x128xf32>
    %151 = arith.addf %150, %4 : vector<8x128xf32>
    %152 = vector.extract_strided_slice %151 {offsets = [0, 0], sizes = [8, 96], strides = [1, 1]} : vector<8x128xf32> to vector<8x96xf32>
    %153 = arith.negf %152 : vector<8x96xf32>
    %154 = math.exp %153 : vector<8x96xf32>
    %cst_42 = arith.constant 1.000000e+00 : f32
    %155 = vector.broadcast %cst_42 : f32 to vector<8x96xf32>
    %156 = arith.addf %155, %154 : vector<8x96xf32>
    %157 = arith.divf %155, %156 : vector<8x96xf32>
    %158 = vector.extract_strided_slice %157 {offsets = [0, 0], sizes = [8, 32], strides = [1, 1]} : vector<8x96xf32> to vector<8x32xf32>
    %159 = vector.extract_strided_slice %157 {offsets = [0, 32], sizes = [8, 32], strides = [1, 1]} : vector<8x96xf32> to vector<8x32xf32>
    %160 = vector.extract_strided_slice %157 {offsets = [0, 64], sizes = [8, 32], strides = [1, 1]} : vector<8x96xf32> to vector<8x32xf32>
    %161 = vector.extract_strided_slice %151 {offsets = [0, 96], sizes = [8, 32], strides = [1, 1]} : vector<8x128xf32> to vector<8x32xf32>
    %162 = math.tanh %161 : vector<8x32xf32>
    %163 = arith.mulf %159, %142 : vector<8x32xf32>
    %164 = arith.mulf %158, %162 : vector<8x32xf32>
    %165 = arith.addf %163, %164 : vector<8x32xf32>
    %166 = math.tanh %165 : vector<8x32xf32>
    %167 = arith.mulf %160, %166 : vector<8x32xf32>
    %c7_i32 = arith.constant 7 : i32
    %168 = arith.index_cast %c7_i32 : i32 to index
    %c0_43 = arith.constant 0 : index
    %c0_44 = arith.constant 0 : index
    %169 = vector.load %arg0[%168, %c0_43, %c0_44] : memref<8x8x16xf32, #tpu.memory_space<vmem>>, vector<1x8x16xf32>
    %170 = vector.shape_cast %169 : vector<1x8x16xf32> to vector<8x16xf32>
    %cst_45 = arith.constant dense<0.000000e+00> : vector<8x128xf32>
    %171 = tpu.matmul %170, %0, %cst_45 {dimension_numbers = #tpu.dot_dimension_numbers<[1], [0], [0], [1], [0, 0, 1, 1], [], []>} : vector<8x16xf32>, vector<16x128xf32>, vector<8x128xf32> -> vector<8x128xf32>
    %cst_46 = arith.constant dense<0.000000e+00> : vector<8x128xf32>
    %172 = tpu.matmul %167, %1, %cst_46 {dimension_numbers = #tpu.dot_dimension_numbers<[1], [0], [0], [1], [0, 0, 1, 1], [], []>} : vector<8x32xf32>, vector<32x128xf32>, vector<8x128xf32> -> vector<8x128xf32>
    %173 = arith.addf %171, %172 : vector<8x128xf32>
    %174 = arith.addf %173, %4 : vector<8x128xf32>
    %175 = vector.extract_strided_slice %174 {offsets = [0, 0], sizes = [8, 96], strides = [1, 1]} : vector<8x128xf32> to vector<8x96xf32>
    %176 = arith.negf %175 : vector<8x96xf32>
    %177 = math.exp %176 : vector<8x96xf32>
    %cst_47 = arith.constant 1.000000e+00 : f32
    %178 = vector.broadcast %cst_47 : f32 to vector<8x96xf32>
    %179 = arith.addf %178, %177 : vector<8x96xf32>
    %180 = arith.divf %178, %179 : vector<8x96xf32>
    %181 = vector.extract_strided_slice %180 {offsets = [0, 0], sizes = [8, 32], strides = [1, 1]} : vector<8x96xf32> to vector<8x32xf32>
    %182 = vector.extract_strided_slice %180 {offsets = [0, 32], sizes = [8, 32], strides = [1, 1]} : vector<8x96xf32> to vector<8x32xf32>
    %183 = vector.extract_strided_slice %180 {offsets = [0, 64], sizes = [8, 32], strides = [1, 1]} : vector<8x96xf32> to vector<8x32xf32>
    %184 = vector.extract_strided_slice %174 {offsets = [0, 96], sizes = [8, 32], strides = [1, 1]} : vector<8x128xf32> to vector<8x32xf32>
    %185 = math.tanh %184 : vector<8x32xf32>
    %186 = arith.mulf %182, %165 : vector<8x32xf32>
    %187 = arith.mulf %181, %185 : vector<8x32xf32>
    %188 = arith.addf %186, %187 : vector<8x32xf32>
    %189 = math.tanh %188 : vector<8x32xf32>
    %190 = arith.mulf %183, %189 : vector<8x32xf32>
    %c8_i32 = arith.constant 8 : i32
    %191 = vector.extract_strided_slice %190 {offsets = [0, 0], sizes = [4, 32], strides = [1, 1]} : vector<8x32xf32> to vector<4x32xf32>
    %192 = vector.extract_strided_slice %190 {offsets = [4, 0], sizes = [4, 32], strides = [1, 1]} : vector<8x32xf32> to vector<4x32xf32>
    %193 = arith.subf %191, %192 : vector<4x32xf32>
    %194 = math.absf %193 : vector<4x32xf32>
    %cst_48 = arith.constant 1.000000e+00 : f32
    %195 = vector.broadcast %cst_48 : f32 to vector<1x32xf32>
    %cst_49 = arith.constant dense<0.000000e+00> : vector<1x4xf32>
    %196 = tpu.matmul %195, %194, %cst_49 {dimension_numbers = #tpu.dot_dimension_numbers<[1], [1], [0], [0], [0, 0, 1, 0], [], []>} : vector<1x32xf32>, vector<4x32xf32>, vector<1x4xf32> -> vector<1x4xf32>
    %cst_50 = arith.constant 0.000000e+00 : f32
    %197 = vector.broadcast %cst_50 : f32 to vector<1x4xf32>
    %198 = arith.subf %197, %196 : vector<1x4xf32>
    %199 = math.exp %198 : vector<1x4xf32>
    %c0_51 = arith.constant 0 : index
    %c0_52 = arith.constant 0 : index
    %200 = vector.load %arg6[%c0_51, %c0_52] : memref<1x4xf32, #tpu.memory_space<vmem>>, vector<1x4xf32>
    tpu.vector_store %arg6[%c0_51, %c0_52], %199 {strides = array<i32>} : memref<1x4xf32, #tpu.memory_space<vmem>>, vector<1x4xf32>,
    return
  }
}

</mosaic_0001>

<bundles_post_ra>
// kernel: tpu_custom_call.1
= control target key start
LH: loop header
LB: loop body
LE: loop exit
PB: predicated region body
PF: predicated region fallthrough
CT: control target
= control target key end

     0   :  { %11 = vsyncpa [#allocation3], 0  ;;  %s2343_s0 = inlined_call_operand.hbm [shape: f32[8,8,16], index: 0, kind: input, shape index: {}]   ;;  %s2344_s1 = inlined_call_operand.hbm [shape: f32[16,128], index: 1, kind: input, shape index: {}]   ;;  %s2345_s2 = inlined_call_operand.hbm [shape: f32[32,128], index: 2, kind: input, shape index: {}]   ;;  %s2346_s3 = inlined_call_operand.vmem [shape: f32[1,128], index: 3, kind: input, shape index: {}]   ;;  %s2347_s4 = inlined_call_operand.vmem [shape: f32[8,32], index: 4, kind: input, shape index: {}]   ;;  %s2348_s5 = inlined_call_operand.vmem [shape: f32[8,32], index: 5, kind: input, shape index: {}]   ;;  %s2349_s6 = inlined_call_operand.hbm [shape: f32[1,4], index: 6, kind: output, shape index: {}]  }
   0x1   :  { %12 = vsyncpa [#allocation6], 0 }
   0x2   :  { %13 = vsyncpa [#allocation4], 0  ;;  %s2073_s21 = smov [#allocation5]   ;;  %s2074_s23 = smov [#allocation2]  }
   0x3   :  { %s31_s22 = sshll.u32 %s2073_s21, 4  ;;  %s19_s24 = sshll.u32 %s2074_s23, 4  ;;  %s32_s22 = int_to_ptr.vmem [resolvable:$true] %s31_s22  ;;  %s2120_s24 = int_to_ptr.vmem [resolvable:$true] %s19_s24 }
   0x4   :  { %s1979_s27 = scalar_lea.hbm %s2344_s1, 256 }
   0x5   :  { %p1980_p0 = scmp.ne.s32.totalorder %s2344_s1, %s1979_s27  ;;  %p1983_p1 = scmp.lt.u32.totalorder %s1979_s27, %s2344_s1 }
   0x7   :  { %p1985_p2 = pnand %p1983_p1, %p1980_p0 }
   0x9   :  { %1988 = shalt.err (!%p1985_p2)
}
   0xa   :  { %s1989_s8 = scalar_lea.vmem %s32_s22, 256  ;;  %p1994_p4 = scmp.lt.s32.totalorder %s32_s22, %s32_s22 }
   0xb   :  { %p1990_p3 = scmp.ne.s32.totalorder %s32_s22, %s1989_s8  ;;  %p1995_p5 = scmp.lt.s32.totalorder %s1989_s8, %s1989_s8 }
   0xd   :  { %p1996_p6 = por %p1995_p5, %p1994_p4 }
   0xf   :  { %p1997_p7 = pnand %p1996_p6, %p1990_p3 }
  0x11   :  { %2000 = shalt.err (!%p1997_p7)
}
  0x12   :  { %s2075_s9 = smov 128   ;;  %s2076_s10 = smov 8  }
  0x13   :  { %37 = dma.hbm_to_vmem [thread:$0]  %s2344_s1, 256, %s32_s22, [#allocation6], %s2075_s9, %s2075_s9, %s2076_s10  }
  0x14   :  { %s2001_s15 = scalar_lea.hbm %s2343_s0, 1024 }
  0x15   :  { %p2002_p8 = scmp.ne.s32.totalorder %s2343_s0, %s2001_s15  ;;  %p2005_p9 = scmp.lt.u32.totalorder %s2001_s15, %s2343_s0 }
  0x17   :  { %p2007_p10 = pnand %p2005_p9, %p2002_p8 }
  0x19   :  { %2010 = shalt.err (!%p2007_p10)
}
  0x1a   :  { %s2011_s20 = scalar_lea.vmem %s2120_s24, 1024  ;;  %p2016_p12 = scmp.lt.s32.totalorder %s2120_s24, %s2120_s24 }
  0x1b   :  { %p2012_p11 = scmp.ne.s32.totalorder %s2120_s24, %s2011_s20  ;;  %p2017_p13 = scmp.lt.s32.totalorder %s2011_s20, %s2011_s20 }
  0x1d   :  { %p2018_p0 = por %p2017_p13, %p2016_p12 }
  0x1f   :  { %p2019_p1 = pnand %p2018_p0, %p2012_p11 }
  0x21   :  { %2022 = shalt.err (!%p2019_p1)
}
  0x22   :  { %25 = dma.hbm_to_vmem [thread:$0]  %s2343_s0, 1024, %s2120_s24, [#allocation3], %s2075_s9, %s2075_s9, %s2076_s10  }
  0x23   :  { %s2077_s22 = smov [#allocation7]   ;;  %s2023_s27 = scalar_lea.hbm %s2345_s2, 512 }
  0x24   :  { %s43_s23 = sshll.u32 %s2077_s22, 4  ;;  %p2024_p2 = scmp.ne.s32.totalorder %s2345_s2, %s2023_s27  ;;  %s44_s23 = int_to_ptr.vmem [resolvable:$true] %s43_s23 }
  0x25   :  { %p2027_p3 = scmp.lt.u32.totalorder %s2023_s27, %s2345_s2 }
  0x27   :  { %p2029_p4 = pnand %p2027_p3, %p2024_p2 }
  0x29   :  { %2032 = shalt.err (!%p2029_p4)
}
  0x2a   :  { %s2033_s8 = scalar_lea.vmem %s44_s23, 512  ;;  %p2038_p6 = scmp.lt.s32.totalorder %s44_s23, %s44_s23 }
  0x2b   :  { %p2034_p5 = scmp.ne.s32.totalorder %s44_s23, %s2033_s8  ;;  %p2039_p7 = scmp.lt.s32.totalorder %s2033_s8, %s2033_s8 }
  0x2d   :  { %p2040_p8 = por %p2039_p7, %p2038_p6 }
  0x2f   :  { %p2041_p9 = pnand %p2040_p8, %p2034_p5 }
  0x31   :  { %2044 = shalt.err (!%p2041_p9)
}
  0x32   :  { %49 = dma.hbm_to_vmem [thread:$0]  %s2345_s2, 512, %s44_s23, [#allocation6], %s2075_s9, %s2075_s9, %s2076_s10  }
  0x33   :  { %2067 = dma.done.wait [#allocation3], 1024  }
  0x34   :  { %2068 = vsyncadd [#allocation3], 4294966272 }
  0x35   :  { %2069 = dma.done.wait [#allocation6], 768  }
  0x36   :  { %2070 = vsyncadd [#allocation6], 4294966528  ;;  %v2078_v0 = vmov 0.0|0.0   ;;  %vm2079_vm0 = vmmov 0   ;;  %v2080_v1 = vmov 0.0   ;;  %v67_v2 = vld [vmem:[#allocation7] sm:$0xff] }
  0x37   :  { %1829 = vmatprep.subr.bf16.mxu0 %v2078_v0  ;;  %1835 = vmatprep.subr.bf16.mxu1 %v2078_v0  ;;  %v68_v3 = vld [vmem:[#allocation7 + $0x8] sm:$0xff]  ;;  %v65_v4 = vld [vmem:[#allocation5] sm:$0xff]  ;;  %v66_v6 = vld [vmem:[#allocation5 + $0x8] sm:$0xff]  ;;  %vm155_vm1 = vcmask 130048   ;;  %vm81_vm2 = vcmask 261120   ;;  %s2081_s11 = smov 32  }
  0x38   :  { %1695 = vmatprep.mubr.msk.f32.mxu1 %vm2079_vm0, %v2080_v1  ;;  %1688 = vmatprep.mubr.msk.f32.mxu0 %vm2079_vm0, %v2080_v1  ;;  %v2178_v5 = vpack.c.bf16 %v68_v3, %v67_v2  ;;  %v69_v7 = vld [vmem:[#allocation7 + $0x10] sm:$0xff]  ;;  %v70_v8 = vld [vmem:[#allocation7 + $0x18] sm:$0xff]  ;;  %v2180_v9 = vpack.c.bf16 %v66_v6, %v65_v4  ;;  %v434_v53 = vld [vmem:[#allocation2 + $0x10] sm:$0xff]  ;;  %vm1569_vm3 = vcmask 24576  }
  0x39   :  { %v2183_v10 = vpack.c.bf16 %v70_v8, %v69_v7  ;;  %v80_v11 = vld [vmem:[#allocation2] sm:$0xff]  ;;  %v259_v32 = vld [vmem:[#allocation2 + $0x8] sm:$0xff] }
  0x3a   :  { %1831 = vmatpush3.bf16.msra.mxu0 %v2178_v5  ;;  %1837 = vmatpush3.bf16.msra.mxu1 %v2180_v9  ;;  %v78_v12 = vld [vmem:[%s2347_s4] sm:$0xff] }
  0x3b   :  { %1832 = vmatprep.subr.bf16.mxu0 %v2078_v0  ;;  %1838 = vmatprep.subr.bf16.mxu1 %v2078_v0  ;;  %v2208_v15 = vld [vmem:[%s2346_s3] ss:$0 sm:$0xff]  ;;  %s2082_s3 = smov 64  }
  0x3c   :  { %v79_v21 = vld [vmem:[%s2348_s5] sm:$0xff]  ;;  %s2084_s5 = smov [#allocation8]  }
  0x3d   :  { %1696 = vmatmul.mubr.msk.f32.vlgmr.msra.gmra.mrb[0].mxu1 %vm155_vm1, %v80_v11  ;;  %s1577_s14 = sshll.u32 %s2084_s5, 4  ;;  %s1578_s14 = int_to_ptr.vmem [resolvable:$true] %s1577_s14 }
  0x3e   :  { %1834 = vmatpush3.bf16.msra.mxu0 %v2183_v10  ;;  %1840 = vmatpush3.bf16.msra.mxu1 %v2178_v5  ;;  %s2045_s15 = scalar_lea.vmem %s1578_s14, 16  ;;  %s2049_s16 = scalar_lea.vmem %s1578_s14, 32 }
  0x3f   :  { %1844 = vmatprep.subr.bf16.mxu0 %v2078_v0  ;;  %1841 = vmatprep.subr.bf16.mxu1 %v2078_v0  ;;  %p2046_p10 = scmp.ne.s32.totalorder %s1578_s14, %s2045_s15  ;;  %p2050_p11 = scmp.lt.s32.totalorder %s1578_s14, %s1578_s14 }
  0x40   :  { %1706 = vmatprep.mubr.msk.f32.mxu1 %vm2079_vm0, %v2080_v1  ;;  %p2051_p12 = scmp.lt.s32.totalorder %s2049_s16, %s2045_s15 }
  0x41   :  { %1689 = vmatmul.mubr.msk.f32.vlgmr.msra.gmra.mrb[0].mxu0 %vm81_vm2, %v78_v12 }
  0x42   :  { %1846 = vmatpush3.bf16.msra.mxu0 %v2180_v9  ;;  %1713 = vmatprep.mubr.msk.f32.mxu0 %vm2079_vm0, %v2080_v1  ;;  %p2052_p13 = por %p2051_p12, %p2050_p11 }
  0x43   :  { %1843 = vmatpush3.bf16.msra.mxu1 %v2183_v10  ;;  %1847 = vmatprep.subr.bf16.mxu0 %v2078_v0 }
  0x44   :  { %1853 = vmatprep.subr.bf16.mxu1 %v2078_v0  ;;  %p2053_p0 = pnand %p2052_p13, %p2046_p10 }
  0x45   :  { %1714 = vmatmul.mubr.msk.f32.vlgmr.msra.gmra.mrb[2].mxu0 %vm155_vm1, %v259_v32 }
  0x46   :  { %1849 = vmatpush3.bf16.msra.mxu0 %v2178_v5  ;;  %1724 = vmatprep.mubr.msk.f32.mxu0 %vm2079_vm0, %v2080_v1 }
  0x47   :  { %1850 = vmatprep.subr.bf16.mxu0 %v2078_v0 }
  0x4a   :  { %1852 = vmatpush3.bf16.msra.mxu0 %v2183_v10 }
  0x4b   :  { %1862 = vmatprep.subr.bf16.mxu0 %v2078_v0 }
 0x110   :  { %v225_v13 = vpop.f32.mrb[0].mxu1 }
 0x111   :  { %v1697_v14 = vpop.f32.mrb[1].mxu1 }
 0x114   :  { %v151_v16 = vpop.f32.mrb[0].mxu0 }
 0x115   :  { %v226_v17 = vadd.f32 %v225_v13, %v151_v16  ;;  %v1690_v18 = vpop.f32.mrb[1].mxu0  ;;  %v609_v16 = vld [vmem:[#allocation2 + $0x18] sm:$0xff] }
 0x117   :  { %v229_v19 = vadd.f32 %v2208_v15, %v226_v17 }
 0x118   :  { %v404_v36 = vpop.f32.mrb[2].mxu0 }
 0x119   :  { %1913 = vtanh.f32 %v229_v19  ;;  %v1590_v22 = vmul.f32 -1.442695, %v229_v19  ;;  %v1715_v37 = vpop.f32.mrb[3].mxu0 }
 0x11a   :  { %v784_v37 = vld [vmem:[#allocation2 + $0x20] sm:$0xff] }
 0x11b   :  { %1915 = vpow2.f32 %v1590_v22 }
 0x123   :  { %v1914_v20 = vpop.eup %1913 }
 0x124   :  { %243 = vrot.lane.b32.xlu0 %v1914_v20, %s2081_s11 }
 0x125   :  { %v1916_v23 = vpop.eup %1915 }
 0x126   :  { %v233_v24 = vadd.f32 1.0, %v1916_v23 }
 0x128   :  { %238 = vrot.lane.b32.xlu0 %v79_v21, %s2081_s11  ;;  %1917 = vrcp.f32 %v233_v24 }
 0x132   :  { %v1918_v25 = vpop.eup %1917 }
 0x196   :  { %v244_v26 = vpop.permute.xlu0 %243 }
 0x197   :  { %v246_v27 = vmul.f32 %v1918_v25, %v244_v26 }
 0x199   :  { %248 = vrot.lane.b32.xlu1 %v246_v27, %s2081_s11 }
 0x19a   :  { %v239_v28 = vpop.permute.xlu0 %238 }
 0x19b   :  { %v241_v29 = vmul.f32 %v1918_v25, %v239_v28 }
 0x20b   :  { %v249_v30 = vpop.permute.xlu1 %248 }
 0x20c   :  { %v251_v31 = vadd.f32 %v249_v30, %v241_v29 }
 0x20e   :  { %1919 = vtanh.f32 %v251_v31 }
 0x218   :  { %v1920_v33 = vpop.eup %1919 }
 0x219   :  { %254 = vrot.lane.b32.xlu1 %v1920_v33, %s2081_s11 }
 0x28b   :  { %v255_v34 = vpop.permute.xlu1 %254 }
 0x28c   :  { %v257_v35 = vmul.f32 %v1918_v25, %v255_v34 }
 0x28e   :  { %261 = vrot.lane.b32.xlu0 %v257_v35, %s2082_s3 }
 0x300   :  { %v262_v38 = vpop.permute.xlu0 %261 }
 0x301   :  { %1707 = vmatmul.mubr.msk.f32.vlgmr.msra.gmra.mrb[2].mxu1 %vm81_vm2, %v262_v38 }
 0x302   :  { %1855 = vmatpush3.bf16.msra.mxu1 %v2180_v9  ;;  %1731 = vmatprep.mubr.msk.f32.mxu1 %vm2079_vm0, %v2080_v1 }
 0x303   :  { %1856 = vmatprep.subr.bf16.mxu1 %v2078_v0 }
 0x305   :  { %1732 = vmatmul.mubr.msk.f32.vlgmr.msra.gmra.mrb[4].mxu1 %vm155_vm1, %v434_v53 }
 0x306   :  { %1858 = vmatpush3.bf16.msra.mxu1 %v2178_v5  ;;  %1742 = vmatprep.mubr.msk.f32.mxu1 %vm2079_vm0, %v2080_v1 }
 0x307   :  { %1859 = vmatprep.subr.bf16.mxu1 %v2078_v0 }
 0x30a   :  { %1861 = vmatpush3.bf16.msra.mxu1 %v2183_v10 }
 0x30b   :  { %1871 = vmatprep.subr.bf16.mxu1 %v2078_v0 }
 0x3d4   :  { %v331_v39 = vpop.f32.mrb[2].mxu1 }
 0x3d5   :  { %v405_v40 = vadd.f32 %v404_v36, %v331_v39  ;;  %v1708_v41 = vpop.f32.mrb[3].mxu1 }
 0x3d7   :  { %v408_v42 = vadd.f32 %v2208_v15, %v405_v40 }
 0x3d8   :  { %v579_v57 = vpop.f32.mrb[4].mxu1 }
 0x3d9   :  { %1921 = vtanh.f32 %v408_v42  ;;  %v1593_v44 = vmul.f32 -1.442695, %v408_v42  ;;  %v1733_v58 = vpop.f32.mrb[5].mxu1 }
 0x3da   :  { %v959_v58 = vld [vmem:[#allocation2 + $0x28] sm:$0xff] }
 0x3db   :  { %1923 = vpow2.f32 %v1593_v44 }
 0x3e3   :  { %v1922_v43 = vpop.eup %1921 }
 0x3e4   :  { %418 = vrot.lane.b32.xlu1 %v1922_v43, %s2081_s11 }
 0x3e5   :  { %v1924_v45 = vpop.eup %1923 }
 0x3e6   :  { %v412_v46 = vadd.f32 1.0, %v1924_v45 }
 0x3e8   :  { %1925 = vrcp.f32 %v412_v46 }
 0x3f2   :  { %v1926_v47 = vpop.eup %1925 }
 0x3f3   :  { %v416_v50 = vmul.f32 %v1926_v47, %v251_v31 }
 0x456   :  { %v419_v48 = vpop.permute.xlu1 %418 }
 0x457   :  { %v421_v49 = vmul.f32 %v1926_v47, %v419_v48 }
 0x459   :  { %423 = vrot.lane.b32.xlu0 %v421_v49, %s2081_s11 }
 0x4cb   :  { %v424_v51 = vpop.permute.xlu0 %423 }
 0x4cc   :  { %v426_v52 = vadd.f32 %v424_v51, %v416_v50 }
 0x4ce   :  { %1927 = vtanh.f32 %v426_v52 }
 0x4d8   :  { %v1928_v54 = vpop.eup %1927 }
 0x4d9   :  { %429 = vrot.lane.b32.xlu1 %v1928_v54, %s2081_s11 }
 0x54b   :  { %v430_v55 = vpop.permute.xlu1 %429 }
 0x54c   :  { %v432_v56 = vmul.f32 %v1926_v47, %v430_v55 }
 0x54e   :  { %436 = vrot.lane.b32.xlu0 %v432_v56, %s2082_s3 }
 0x5c0   :  { %v437_v59 = vpop.permute.xlu0 %436 }
 0x5c1   :  { %1725 = vmatmul.mubr.msk.f32.vlgmr.msra.gmra.mrb[4].mxu0 %vm81_vm2, %v437_v59 }
 0x5c2   :  { %1864 = vmatpush3.bf16.msra.mxu0 %v2180_v9  ;;  %1749 = vmatprep.mubr.msk.f32.mxu0 %vm2079_vm0, %v2080_v1 }
 0x5c3   :  { %1865 = vmatprep.subr.bf16.mxu0 %v2078_v0 }
 0x5c5   :  { %1750 = vmatmul.mubr.msk.f32.vlgmr.msra.gmra.mrb[6].mxu0 %vm155_vm1, %v609_v16 }
 0x5c6   :  { %1867 = vmatpush3.bf16.msra.mxu0 %v2178_v5  ;;  %1760 = vmatprep.mubr.msk.f32.mxu0 %vm2079_vm0, %v2080_v1 }
 0x5c7   :  { %1868 = vmatprep.subr.bf16.mxu0 %v2078_v0 }
 0x5ca   :  { %1870 = vmatpush3.bf16.msra.mxu0 %v2183_v10 }
 0x5cb   :  { %1880 = vmatprep.subr.bf16.mxu0 %v2078_v0 }
 0x694   :  { %v506_v60 = vpop.f32.mrb[4].mxu0 }
 0x695   :  { %v580_v61 = vadd.f32 %v579_v57, %v506_v60  ;;  %v1726_v62 = vpop.f32.mrb[5].mxu0 }
 0x697   :  { %v583_v63 = vadd.f32 %v2208_v15, %v580_v61 }
 0x698   :  { %v754_v20 = vpop.f32.mrb[6].mxu0 }
 0x699   :  { %1929 = vtanh.f32 %v583_v63  ;;  %v1596_v3 = vmul.f32 -1.442695, %v583_v63  ;;  %v1751_v21 = vpop.f32.mrb[7].mxu0 }
 0x69a   :  { %v1134_v21 = vld [vmem:[#allocation2 + $0x30] sm:$0xff] }
 0x69b   :  { %1931 = vpow2.f32 %v1596_v3 }
 0x6a3   :  { %v1930_v2 = vpop.eup %1929 }
 0x6a4   :  { %593 = vrot.lane.b32.xlu1 %v1930_v2, %s2081_s11 }
 0x6a5   :  { %v1932_v4 = vpop.eup %1931 }
 0x6a6   :  { %v587_v6 = vadd.f32 1.0, %v1932_v4 }
 0x6a8   :  { %1933 = vrcp.f32 %v587_v6 }
 0x6b2   :  { %v1934_v7 = vpop.eup %1933 }
 0x6b3   :  { %v591_v12 = vmul.f32 %v1934_v7, %v426_v52 }
 0x716   :  { %v594_v8 = vpop.permute.xlu1 %593 }
 0x717   :  { %v596_v11 = vmul.f32 %v1934_v7, %v594_v8 }
 0x719   :  { %598 = vrot.lane.b32.xlu0 %v596_v11, %s2081_s11 }
 0x78b   :  { %v599_v13 = vpop.permute.xlu0 %598 }
 0x78c   :  { %v601_v14 = vadd.f32 %v599_v13, %v591_v12 }
 0x78e   :  { %1935 = vtanh.f32 %v601_v14 }
 0x798   :  { %v1936_v17 = vpop.eup %1935 }
 0x799   :  { %604 = vrot.lane.b32.xlu1 %v1936_v17, %s2081_s11 }
 0x80b   :  { %v605_v18 = vpop.permute.xlu1 %604 }
 0x80c   :  { %v607_v19 = vmul.f32 %v1934_v7, %v605_v18 }
 0x80e   :  { %611 = vrot.lane.b32.xlu0 %v607_v19, %s2082_s3 }
 0x880   :  { %v612_v22 = vpop.permute.xlu0 %611 }
 0x881   :  { %1743 = vmatmul.mubr.msk.f32.vlgmr.msra.gmra.mrb[6].mxu1 %vm81_vm2, %v612_v22 }
 0x882   :  { %1873 = vmatpush3.bf16.msra.mxu1 %v2180_v9  ;;  %1767 = vmatprep.mubr.msk.f32.mxu1 %vm2079_vm0, %v2080_v1 }
 0x883   :  { %1874 = vmatprep.subr.bf16.mxu1 %v2078_v0 }
 0x885   :  { %1768 = vmatmul.mubr.msk.f32.vlgmr.msra.gmra.mrb[8].mxu1 %vm155_vm1, %v784_v37 }
 0x886   :  { %1876 = vmatpush3.bf16.msra.mxu1 %v2178_v5  ;;  %1778 = vmatprep.mubr.msk.f32.mxu1 %vm2079_vm0, %v2080_v1 }
 0x887   :  { %1877 = vmatprep.subr.bf16.mxu1 %v2078_v0 }
 0x88a   :  { %1879 = vmatpush3.bf16.msra.mxu1 %v2183_v10 }
 0x88b   :  { %1889 = vmatprep.subr.bf16.mxu1 %v2078_v0 }
 0x954   :  { %v681_v23 = vpop.f32.mrb[6].mxu1 }
 0x955   :  { %v755_v24 = vadd.f32 %v754_v20, %v681_v23  ;;  %v1744_v25 = vpop.f32.mrb[7].mxu1 }
 0x957   :  { %v758_v26 = vadd.f32 %v2208_v15, %v755_v24 }
 0x958   :  { %v929_v41 = vpop.f32.mrb[8].mxu1 }
 0x959   :  { %1937 = vtanh.f32 %v758_v26  ;;  %v1599_v28 = vmul.f32 -1.442695, %v758_v26  ;;  %v1769_v42 = vpop.f32.mrb[9].mxu1 }
 0x95b   :  { %1939 = vpow2.f32 %v1599_v28 }
 0x963   :  { %v1938_v27 = vpop.eup %1937 }
 0x964   :  { %768 = vrot.lane.b32.xlu1 %v1938_v27, %s2081_s11 }
 0x965   :  { %v1940_v29 = vpop.eup %1939 }
 0x966   :  { %v762_v30 = vadd.f32 1.0, %v1940_v29 }
 0x968   :  { %1941 = vrcp.f32 %v762_v30 }
 0x972   :  { %v1942_v31 = vpop.eup %1941 }
 0x973   :  { %v766_v34 = vmul.f32 %v1942_v31, %v601_v14 }
 0x9d6   :  { %v769_v32 = vpop.permute.xlu1 %768 }
 0x9d7   :  { %v771_v33 = vmul.f32 %v1942_v31, %v769_v32 }
 0x9d9   :  { %773 = vrot.lane.b32.xlu0 %v771_v33, %s2081_s11 }
 0xa4b   :  { %v774_v35 = vpop.permute.xlu0 %773 }
 0xa4c   :  { %v776_v36 = vadd.f32 %v774_v35, %v766_v34 }
 0xa4e   :  { %1943 = vtanh.f32 %v776_v36 }
 0xa58   :  { %v1944_v38 = vpop.eup %1943 }
 0xa59   :  { %779 = vrot.lane.b32.xlu1 %v1944_v38, %s2081_s11  ;;  %v1309_v38 = vld [vmem:[#allocation2 + $0x38] sm:$0xff] }
 0xacb   :  { %v780_v39 = vpop.permute.xlu1 %779 }
 0xacc   :  { %v782_v40 = vmul.f32 %v1942_v31, %v780_v39 }
 0xace   :  { %786 = vrot.lane.b32.xlu0 %v782_v40, %s2082_s3 }
 0xb40   :  { %v787_v43 = vpop.permute.xlu0 %786 }
 0xb41   :  { %1761 = vmatmul.mubr.msk.f32.vlgmr.msra.gmra.mrb[8].mxu0 %vm81_vm2, %v787_v43 }
 0xb42   :  { %1882 = vmatpush3.bf16.msra.mxu0 %v2180_v9  ;;  %1785 = vmatprep.mubr.msk.f32.mxu0 %vm2079_vm0, %v2080_v1 }
 0xb43   :  { %1883 = vmatprep.subr.bf16.mxu0 %v2078_v0 }
 0xb45   :  { %1786 = vmatmul.mubr.msk.f32.vlgmr.msra.gmra.mrb[10].mxu0 %vm155_vm1, %v959_v58 }
 0xb46   :  { %1885 = vmatpush3.bf16.msra.mxu0 %v2178_v5  ;;  %1796 = vmatprep.mubr.msk.f32.mxu0 %vm2079_vm0, %v2080_v1 }
 0xb47   :  { %1886 = vmatprep.subr.bf16.mxu0 %v2078_v0 }
 0xb4a   :  { %1888 = vmatpush3.bf16.msra.mxu0 %v2183_v10 }
 0xb4b   :  { %1898 = vmatprep.subr.bf16.mxu0 %v2078_v0 }
 0xc14   :  { %v856_v44 = vpop.f32.mrb[8].mxu0 }
 0xc15   :  { %v930_v45 = vadd.f32 %v929_v41, %v856_v44  ;;  %v1762_v46 = vpop.f32.mrb[9].mxu0 }
 0xc17   :  { %v933_v47 = vadd.f32 %v2208_v15, %v930_v45 }
 0xc18   :  { %v1104_v62 = vpop.f32.mrb[10].mxu0 }
 0xc19   :  { %1945 = vtanh.f32 %v933_v47  ;;  %v1602_v49 = vmul.f32 -1.442695, %v933_v47  ;;  %v1787_v63 = vpop.f32.mrb[11].mxu0 }
 0xc1b   :  { %1947 = vpow2.f32 %v1602_v49 }
 0xc23   :  { %v1946_v48 = vpop.eup %1945 }
 0xc24   :  { %943 = vrot.lane.b32.xlu1 %v1946_v48, %s2081_s11 }
 0xc25   :  { %v1948_v50 = vpop.eup %1947 }
 0xc26   :  { %v937_v51 = vadd.f32 1.0, %v1948_v50 }
 0xc28   :  { %1949 = vrcp.f32 %v937_v51 }
 0xc32   :  { %v1950_v52 = vpop.eup %1949 }
 0xc33   :  { %v941_v55 = vmul.f32 %v1950_v52, %v776_v36 }
 0xc96   :  { %v944_v53 = vpop.permute.xlu1 %943 }
 0xc97   :  { %v946_v54 = vmul.f32 %v1950_v52, %v944_v53 }
 0xc99   :  { %948 = vrot.lane.b32.xlu0 %v946_v54, %s2081_s11 }
 0xd0b   :  { %v949_v56 = vpop.permute.xlu0 %948 }
 0xd0c   :  { %v951_v57 = vadd.f32 %v949_v56, %v941_v55 }
 0xd0e   :  { %1951 = vtanh.f32 %v951_v57 }
 0xd18   :  { %v1952_v59 = vpop.eup %1951 }
 0xd19   :  { %954 = vrot.lane.b32.xlu1 %v1952_v59, %s2081_s11 }
 0xd8b   :  { %v955_v60 = vpop.permute.xlu1 %954 }
 0xd8c   :  { %v957_v61 = vmul.f32 %v1950_v52, %v955_v60 }
 0xd8e   :  { %961 = vrot.lane.b32.xlu0 %v957_v61, %s2082_s3 }
 0xe00   :  { %v962_v2 = vpop.permute.xlu0 %961 }
 0xe01   :  { %1779 = vmatmul.mubr.msk.f32.vlgmr.msra.gmra.mrb[10].mxu1 %vm81_vm2, %v962_v2  ;;  %v2083_v2 = vmov 1.0  }
 0xe02   :  { %1891 = vmatpush3.bf16.msra.mxu1 %v2180_v9  ;;  %1803 = vmatprep.mubr.msk.f32.mxu1 %vm2079_vm0, %v2080_v1 }
 0xe03   :  { %1892 = vmatprep.subr.bf16.mxu1 %v2078_v0 }
 0xe05   :  { %1804 = vmatmul.mubr.msk.f32.vlgmr.msra.gmra.mrb[12].mxu1 %vm155_vm1, %v1134_v21 }
 0xe06   :  { %1894 = vmatpush3.bf16.msra.mxu1 %v2178_v5  ;;  %1814 = vmatprep.mubr.msk.f32.mxu1 %vm2079_vm0, %v2080_v1 }
 0xe07   :  { %1895 = vmatprep.subr.bf16.mxu1 %v2078_v0 }
 0xe0a   :  { %1897 = vmatpush3.bf16.msra.mxu1 %v2183_v10 }
 0xed4   :  { %v1031_v3 = vpop.f32.mrb[10].mxu1 }
 0xed5   :  { %v1105_v4 = vadd.f32 %v1104_v62, %v1031_v3  ;;  %v1780_v6 = vpop.f32.mrb[11].mxu1 }
 0xed7   :  { %v1108_v7 = vadd.f32 %v2208_v15, %v1105_v4 }
 0xed8   :  { %v1279_v25 = vpop.f32.mrb[12].mxu1 }
 0xed9   :  { %1953 = vtanh.f32 %v1108_v7  ;;  %v1605_v11 = vmul.f32 -1.442695, %v1108_v7  ;;  %v1805_v26 = vpop.f32.mrb[13].mxu1 }
 0xedb   :  { %1955 = vpow2.f32 %v1605_v11 }
 0xee3   :  { %v1954_v8 = vpop.eup %1953 }
 0xee4   :  { %1118 = vrot.lane.b32.xlu1 %v1954_v8, %s2081_s11 }
 0xee5   :  { %v1956_v12 = vpop.eup %1955 }
 0xee6   :  { %v1112_v13 = vadd.f32 1.0, %v1956_v12 }
 0xee8   :  { %1957 = vrcp.f32 %v1112_v13 }
 0xef2   :  { %v1958_v14 = vpop.eup %1957 }
 0xef3   :  { %v1116_v18 = vmul.f32 %v1958_v14, %v951_v57 }
 0xf56   :  { %v1119_v16 = vpop.permute.xlu1 %1118 }
 0xf57   :  { %v1121_v17 = vmul.f32 %v1958_v14, %v1119_v16 }
 0xf59   :  { %1123 = vrot.lane.b32.xlu0 %v1121_v17, %s2081_s11 }
 0xfcb   :  { %v1124_v19 = vpop.permute.xlu0 %1123 }
 0xfcc   :  { %v1126_v20 = vadd.f32 %v1124_v19, %v1116_v18 }
 0xfce   :  { %1959 = vtanh.f32 %v1126_v20 }
 0xfd8   :  { %v1960_v22 = vpop.eup %1959 }
 0xfd9   :  { %1129 = vrot.lane.b32.xlu1 %v1960_v22, %s2081_s11 }
0x104b   :  { %v1130_v23 = vpop.permute.xlu1 %1129 }
0x104c   :  { %v1132_v24 = vmul.f32 %v1958_v14, %v1130_v23 }
0x104e   :  { %1136 = vrot.lane.b32.xlu0 %v1132_v24, %s2082_s3 }
0x10c0   :  { %v1137_v27 = vpop.permute.xlu0 %1136 }
0x10c1   :  { %1797 = vmatmul.mubr.msk.f32.vlgmr.msra.gmra.mrb[12].mxu0 %vm81_vm2, %v1137_v27 }
0x10c2   :  { %1900 = vmatpush3.bf16.msra.mxu0 %v2180_v9  ;;  %1821 = vmatprep.mubr.msk.f32.mxu0 %vm2079_vm0, %v2080_v1 }
0x10c3   :  { %1824 = vmatprep.subr.mxu0 %v2080_v1 }
0x10c5   :  { %1822 = vmatmul.mubr.msk.f32.vlgmr.msra.gmra.mrb[14].mxu0 %vm155_vm1, %v1309_v38 }
0x10c6   :  { %1826 = vmatprep.mubr.msk.f32.mxu0 %vm2079_vm0, %v2080_v1 }
0x1194   :  { %v1206_v0 = vpop.f32.mrb[12].mxu0 }
0x1195   :  { %v1280_v5 = vadd.f32 %v1279_v25, %v1206_v0  ;;  %v1798_v10 = vpop.f32.mrb[13].mxu0 }
0x1197   :  { %v1283_v28 = vadd.f32 %v2208_v15, %v1280_v5 }
0x1198   :  { %v1454_v42 = vpop.f32.mrb[14].mxu0 }
0x1199   :  { %1961 = vtanh.f32 %v1283_v28  ;;  %v1608_v30 = vmul.f32 -1.442695, %v1283_v28  ;;  %v1823_v43 = vpop.f32.mrb[15].mxu0 }
0x119b   :  { %1963 = vpow2.f32 %v1608_v30 }
0x11a3   :  { %v1962_v29 = vpop.eup %1961 }
0x11a4   :  { %1293 = vrot.lane.b32.xlu1 %v1962_v29, %s2081_s11 }
0x11a5   :  { %v1964_v31 = vpop.eup %1963 }
0x11a6   :  { %v1287_v32 = vadd.f32 1.0, %v1964_v31 }
0x11a8   :  { %1965 = vrcp.f32 %v1287_v32 }
0x11b2   :  { %v1966_v9 = vpop.eup %1965 }
0x11b3   :  { %v1291_v35 = vmul.f32 %v1966_v9, %v1126_v20 }
0x1216   :  { %v1294_v33 = vpop.permute.xlu1 %1293 }
0x1217   :  { %v1296_v34 = vmul.f32 %v1966_v9, %v1294_v33 }
0x1219   :  { %1298 = vrot.lane.b32.xlu0 %v1296_v34, %s2081_s11 }
0x128b   :  { %v1299_v36 = vpop.permute.xlu0 %1298 }
0x128c   :  { %v1301_v37 = vadd.f32 %v1299_v36, %v1291_v35 }
0x128e   :  { %1967 = vtanh.f32 %v1301_v37 }
0x1298   :  { %v1968_v39 = vpop.eup %1967 }
0x1299   :  { %1304 = vrot.lane.b32.xlu1 %v1968_v39, %s2081_s11 }
0x130b   :  { %v1305_v40 = vpop.permute.xlu1 %1304 }
0x130c   :  { %v1307_v41 = vmul.f32 %v1966_v9, %v1305_v40 }
0x130e   :  { %1311 = vrot.lane.b32.xlu0 %v1307_v41, %s2082_s3 }
0x1380   :  { %v1312_v44 = vpop.permute.xlu0 %1311 }
0x1381   :  { %1815 = vmatmul.mubr.msk.f32.vlgmr.msra.gmra.mrb[14].mxu1 %vm81_vm2, %v1312_v44 }
0x1454   :  { %v1381_v45 = vpop.f32.mrb[14].mxu1 }
0x1455   :  { %v1455_v46 = vadd.f32 %v1454_v42, %v1381_v45  ;;  %v1816_v47 = vpop.f32.mrb[15].mxu1 }
0x1457   :  { %v1458_v48 = vadd.f32 %v2208_v15, %v1455_v46 }
0x1459   :  { %1969 = vtanh.f32 %v1458_v48  ;;  %v1611_v1 = vmul.f32 -1.442695, %v1458_v48 }
0x145b   :  { %1971 = vpow2.f32 %v1611_v1 }
0x1463   :  { %v1970_v49 = vpop.eup %1969 }
0x1464   :  { %1468 = vrot.lane.b32.xlu1 %v1970_v49, %s2081_s11 }
0x1465   :  { %v1972_v50 = vpop.eup %1971 }
0x1466   :  { %v1462_v51 = vadd.f32 1.0, %v1972_v50 }
0x1468   :  { %1973 = vrcp.f32 %v1462_v51 }
0x1472   :  { %v1974_v52 = vpop.eup %1973 }
0x1473   :  { %v1466_v55 = vmul.f32 %v1974_v52, %v1301_v37 }
0x14d6   :  { %v1469_v53 = vpop.permute.xlu1 %1468 }
0x14d7   :  { %v1471_v54 = vmul.f32 %v1974_v52, %v1469_v53 }
0x14d9   :  { %1473 = vrot.lane.b32.xlu0 %v1471_v54, %s2081_s11 }
0x154b   :  { %v1474_v56 = vpop.permute.xlu0 %1473 }
0x154c   :  { %v1476_v57 = vadd.f32 %v1474_v56, %v1466_v55 }
0x154e   :  { %1975 = vtanh.f32 %v1476_v57 }
0x1558   :  { %v1976_v58 = vpop.eup %1975 }
0x1559   :  { %1479 = vrot.lane.b32.xlu1 %v1976_v58, %s2081_s11 }
0x15cb   :  { %v1480_v15 = vpop.permute.xlu1 %1479 }
0x15cc   :  { %v1482_v59 = vmul.f32 %v1974_v52, %v1480_v15 }
0x15ce   :  { %v1484_v60 = vrot.slane %v1482_v59, 4 }
0x15d0   :  { %v1486_v61 = vsub.f32 %v1482_v59, %v1484_v60 }
0x15d2   :  { %v1487_v62 = vand.u32 2147483647, %v1486_v61 }
0x15d4   :  { %1489 = vrot.lane.b32.xlu0 %v1487_v62, %s2082_s3 }
0x1646   :  { %v1490_v63 = vpop.permute.xlu0 %1489 }
0x1647   :  { %1825 = vmatpush3.xpose.msk.msra.mxu0 %vm81_vm2, %v1490_v63 }
0x164a   :  { %1827 = vmatmul.mubr.msk.f32.vlgmr.msra.gmra.mrb[16].mxu0 %vm81_vm2, %v2083_v2 }
0x171d   :  { %v1562_v3 = vpop.f32.mrb[16].mxu0 }
0x171e   :  { %v1566_v4 = vsub.f32 0.0, %v1562_v3  ;;  %v1828_v6 = vpop.f32.mrb[17].mxu0 }
0x1720   :  { %v1567_v7 = vmul.f32 1.442695, %v1566_v4 }
0x1722   :  { %1977 = vpow2.f32 %v1567_v7 }
0x172c   :  { %v1978_v8 = vpop.eup %1977 }
0x172d   :  { %1570 = vst.msk [vmem:[#allocation8] sm:$0x1] %vm1569_vm3, %v1978_v8 }
0x172e   :  { %2056 = shalt.err (!%p2053_p0)
}
0x172f   :  { %s2057_s19 = scalar_lea.hbm %s2349_s6, 16 }
0x1730   :  { %p2058_p1 = scmp.ne.s32.totalorder %s2349_s6, %s2057_s19  ;;  %p2061_p2 = scmp.lt.u32.totalorder %s2057_s19, %s2349_s6 }
0x1732   :  { %p2063_p3 = pnand %p2061_p2, %p2058_p1 }
0x1734   :  { %2066 = shalt.err (!%p2063_p3)
}
0x1735   :  { %1580 = dma.vmem_to_hbm [thread:$0]  %s1578_s14, 16, %s2349_s6, [#allocation4]  }
0x1736   :  { %2071 = dma.done.wait [#allocation4], 16  }
0x1737   :  { %2072 = vsyncadd [#allocation4], 4294967280 }
0x1738   :  { %1584 = vsyncpa [#allocation3], 1 }
0x1739   :  { %1585 = vsyncpa [#allocation6], 1 }
0x173a   :  { %1586 = vsyncpa [#allocation4], 1 }

</bundles_post_ra>
